<compile_context>
chip_gen: v7x
topology: tpu7x:2x2x1
jax: 0.10.0
libtpu: 0.0.40
codegen_flags: <defaults>
</compile_context>

<pallas_src>
import jax
import jax.numpy as jnp
from jax import lax
from jax.experimental import pallas as pl
from jax.experimental.pallas import tpu as pltpu

INPUT_SIZE = 10
HIDDEN_SIZE = 5
OUTPUT_SIZE = 1          # kernel exploits OUTPUT_SIZE == 1 (fc2 = sublane reduce)

_H_PAD = 8               # hidden dim padded to one sublane tile
_P_COLS = 16             # param-slab lane width (>= INPUT_SIZE + 3), one vreg tile
_CHUNK = 1024            # rows per inner compute chunk (8 lane-tiles of output)
_NOGRID_MAX = 2048       # batches up to this size skip the grid entirely


def _round_up(n, m):
    return -(-n // m) * m


def _vmem_limit_bytes() -> int:
    """Generation-aware scoped-VMEM budget (conservative default is v7x-safe)."""
    kind = ""
    try:
        kind = jax.devices()[0].device_kind.lower()
    except Exception:
        pass
    if ("v5" in kind) or ("v6" in kind):
        return 80 * 1024 * 1024     # v5e / v6e: 128 MiB physical VMEM
    return 44 * 1024 * 1024         # v7x (64 MiB physical) and unknown: headroom


def _pack_params(w1, b1, w2, b2):
    """One sublane-aligned (8, 16) f32 slab.

    Columns: [0:IN] = w1^T (rows >= HIDDEN are zero), IN = b1, IN+1 = w2,
    (row 0, IN+2) = b2.  Zero-padded hidden rows contribute exactly 0 to fc2.
    """
    w1 = jnp.asarray(w1, jnp.float32).reshape(INPUT_SIZE, HIDDEN_SIZE)
    b1 = jnp.asarray(b1, jnp.float32).reshape(HIDDEN_SIZE)
    w2 = jnp.asarray(w2, jnp.float32).reshape(HIDDEN_SIZE)   # needs OUTPUT_SIZE == 1
    b2 = jnp.asarray(b2, jnp.float32).reshape(())
    p = jnp.zeros((_H_PAD, _P_COLS), jnp.float32)
    p = p.at[:HIDDEN_SIZE, :INPUT_SIZE].set(w1.T)
    p = p.at[:HIDDEN_SIZE, INPUT_SIZE].set(b1)
    p = p.at[:HIDDEN_SIZE, INPUT_SIZE + 1].set(w2)
    p = p.at[0, INPUT_SIZE + 2].set(b2)
    return p


def _make_kernel(block_rows: int, chunk: int):
    """Kernel for one (block_rows, INPUT_SIZE) x-block -> (1, block_rows) output."""
    chunk = max(1, min(chunk, block_rows))
    n_full, rem = divmod(block_rows, chunk)

    def kernel(x_ref, p_ref, o_ref):
        # Param slab: a single resident (8, 16) VMEM tile; all slices stay
        # inside one sublane tile (no misaligned-crossing relayouts per step).
        w1t = p_ref[:, 0:INPUT_SIZE]                       # (8, IN)
        b1c = p_ref[:, INPUT_SIZE:INPUT_SIZE + 1]          # (8, 1)
        w2c = p_ref[:, INPUT_SIZE + 1:INPUT_SIZE + 2]      # (8, 1)
        b2s = p_ref[0:1, INPUT_SIZE + 2:INPUT_SIZE + 3]    # (1, 1)

        def compute(row0, rows):                           # row0/rows are static
            xb = x_ref[pl.ds(row0, rows), :]               # (rows, IN)
            # hT = w1^T @ x^T -> (8, rows).  Contraction is over IN, the minor
            # dim of BOTH operands (MXU-native transposed-rhs matmul), so the
            # big operand is never transposed and the batch lands on lanes.
            hT = lax.dot_general(
                w1t, xb, (((1,), (1,)), ((), ())),
                preferred_element_type=jnp.float32)
            hT = jnp.maximum(hT + b1c, 0.0)                # bias + ReLU (8, rows)
            # fc2 (output width 1): VPU FMA + sublane reduce; skip the MXU.
            yT = jnp.sum(hT * w2c, axis=0, keepdims=True) + b2s   # (1, rows)
            # Lane-dense store into the (1, block_rows) output block.
            o_ref[:, pl.ds(row0, rows)] = yT.astype(o_ref.dtype)

        for c in range(n_full):        # static unroll: all offsets are static
            compute(c * chunk, chunk)
        if rem:
            compute(n_full * chunk, rem)

    return kernel


def simple_nn_forward(x, w1, b1, w2, b2, *, batch_tile=16384):
    """relu(x @ w1 + b1) @ w2 + b2 for x of shape (B, INPUT_SIZE) -> (B, 1)."""
    B = x.shape[0]
    assert x.shape == (B, INPUT_SIZE)
    x = x.astype(jnp.float32)
    params = _pack_params(w1, b1, w2, b2)

    if B <= _NOGRID_MAX:
        # Small batch: single invocation, whole arrays resident in VMEM,
        # no grid / pipeline machinery at all.
        out = pl.pallas_call(
            _make_kernel(B, _CHUNK),
            out_shape=jax.ShapeDtypeStruct((1, B), jnp.float32),
            in_specs=[
                pl.BlockSpec(memory_space=pltpu.MemorySpace.VMEM),   # x
                pl.BlockSpec(memory_space=pltpu.MemorySpace.VMEM),   # param slab
            ],
            out_specs=pl.BlockSpec(memory_space=pltpu.MemorySpace.VMEM),
        )(x, params)
        return out.reshape(B, OUTPUT_SIZE)

    # Gridded path: large lane-aligned batch tiles amortize per-step overhead;
    # keep >= 2 tiles so both v7x TensorCores get work; clip TB so the
    # double-buffered tiles fit the per-generation VMEM budget.
    vmem_limit = _vmem_limit_bytes()
    # Double-buffered per-row VMEM cost: x block (10 lanes padded to 128)
    # = 512 B/row, out block ((1, tb) padded to 8 sublanes) = 32 B/row.
    max_tb = (vmem_limit - 4 * 1024 * 1024) // (2 * (512 + 32))
    half = _round_up(-(-B // 2), _CHUNK)              # >= ceil(B/2) -> >= 2 tiles
    cap = max(_CHUNK, (max_tb // _CHUNK) * _CHUNK)
    tb = max(_CHUNK, min(int(batch_tile), half, cap))
    n_tiles = pl.cdiv(B, tb)

    out = pl.pallas_call(
        _make_kernel(tb, _CHUNK),
        out_shape=jax.ShapeDtypeStruct((1, B), jnp.float32),
        grid=(n_tiles,),
        in_specs=[
            pl.BlockSpec((tb, INPUT_SIZE), lambda i: (i, 0)),    # x row tiles
            pl.BlockSpec((_H_PAD, _P_COLS), lambda i: (0, 0)),   # resident params
        ],
        out_specs=pl.BlockSpec((1, tb), lambda i: (0, i)),       # lane-dense out
        compiler_params=pltpu.CompilerParams(
            dimension_semantics=("parallel",),
            vmem_limit_bytes=int(vmem_limit)),
    )(x, params)
    # (1, B) -> (B, 1): contiguous reshape; no jnp.pad / out[:B] copies for
    # ragged B (boundary blocks are masked by Pallas).
    return out.reshape(B, OUTPUT_SIZE)


def init_params(key):
    # Mimic nn.Linear init: uniform(-1/sqrt(fan_in), +1/sqrt(fan_in)).
    k1, k2, k3, k4 = jax.random.split(key, 4)
    bound1 = 1.0 / jnp.sqrt(float(INPUT_SIZE))
    bound2 = 1.0 / jnp.sqrt(float(HIDDEN_SIZE))
    w1 = jax.random.uniform(k1, (INPUT_SIZE, HIDDEN_SIZE), jnp.float32, -bound1, bound1)
    b1 = jax.random.uniform(k2, (HIDDEN_SIZE,), jnp.float32, -bound1, bound1)
    w2 = jax.random.uniform(k3, (HIDDEN_SIZE, OUTPUT_SIZE), jnp.float32, -bound2, bound2)
    b2 = jax.random.uniform(k4, (OUTPUT_SIZE,), jnp.float32, -bound2, bound2)
    return w1, b1, w2, b2


if __name__ == "__main__":
    key = jax.random.PRNGKey(0)
    pkey, xkey1, xkey2 = jax.random.split(key, 3)
    w1, b1, w2, b2 = init_params(pkey)

    def ref_forward(xx):
        h = jnp.maximum(
            jnp.dot(xx, w1, precision=jax.lax.Precision.HIGHEST) + b1, 0.0)
        return jnp.dot(h, w2, precision=jax.lax.Precision.HIGHEST) + b2

    # 1) Tiny batch -> single-shot, no-grid path.
    x_small = jax.random.normal(xkey1, (8, INPUT_SIZE), jnp.float32)
    out_small = jax.block_until_ready(simple_nn_forward(x_small, w1, b1, w2, b2))
    assert out_small.shape == (8, OUTPUT_SIZE)
    assert jnp.allclose(out_small, ref_forward(x_small), atol=1e-3, rtol=1e-3)

    # 2) Larger ragged batch -> gridded, lane-dense path (>= 2 tiles, partial tail).
    x_big = jax.random.normal(xkey2, (5000, INPUT_SIZE), jnp.float32)
    out_big = jax.block_until_ready(simple_nn_forward(x_big, w1, b1, w2, b2))
    assert out_big.shape == (5000, OUTPUT_SIZE)
    assert jnp.allclose(out_big, ref_forward(x_big), atol=1e-3, rtol=1e-3)

    print("KERNEL_OK")
</pallas_src>

<mosaic_0001>
module attributes {stable_mosaic.version = 11 : i64} {
  func.func @kernel(%arg0: memref<8x10xf32, #tpu.memory_space<vmem>>, %arg1: memref<8x16xf32, #tpu.memory_space<vmem>>, %arg2: memref<1x8xf32, #tpu.memory_space<vmem>>) attributes {dimension_semantics = [], scalar_prefetch = 0 : i64, scratch_operands = 0 : i64, tpu.core_type = #tpu.core_type<tc>} {
    %c0 = arith.constant 0 : index
    %c0_0 = arith.constant 0 : index
    %0 = vector.load %arg1[%c0, %c0_0] : memref<8x16xf32, #tpu.memory_space<vmem>>, vector<8x10xf32>
    %c0_1 = arith.constant 0 : index
    %c10 = arith.constant 10 : index
    %1 = vector.load %arg1[%c0_1, %c10] : memref<8x16xf32, #tpu.memory_space<vmem>>, vector<8x1xf32>
    %c0_2 = arith.constant 0 : index
    %c11 = arith.constant 11 : index
    %2 = vector.load %arg1[%c0_2, %c11] : memref<8x16xf32, #tpu.memory_space<vmem>>, vector<8x1xf32>
    %c0_3 = arith.constant 0 : index
    %c12 = arith.constant 12 : index
    %3 = vector.load %arg1[%c0_3, %c12] : memref<8x16xf32, #tpu.memory_space<vmem>>, vector<1x1xf32>
    %c0_4 = arith.constant 0 : index
    %c0_5 = arith.constant 0 : index
    %4 = vector.load %arg0[%c0_4, %c0_5] : memref<8x10xf32, #tpu.memory_space<vmem>>, vector<8x10xf32>
    %cst = arith.constant dense<0.000000e+00> : vector<8x8xf32>
    %5 = tpu.matmul %0, %4, %cst {dimension_numbers = #tpu.dot_dimension_numbers<[1], [1], [0], [0], [0, 0, 1, 0], [], []>} : vector<8x10xf32>, vector<8x10xf32>, vector<8x8xf32> -> vector<8x8xf32>
    %6 = vector.broadcast %1 : vector<8x1xf32> to vector<8x8xf32>
    %7 = arith.addf %5, %6 : vector<8x8xf32>
    %cst_6 = arith.constant 0.000000e+00 : f32
    %8 = vector.broadcast %cst_6 : f32 to vector<8x8xf32>
    %9 = arith.maximumf %7, %8 : vector<8x8xf32>
    %10 = vector.broadcast %2 : vector<8x1xf32> to vector<8x8xf32>
    %11 = arith.mulf %9, %10 : vector<8x8xf32>
    %cst_7 = arith.constant dense<0.000000e+00> : vector<8xf32>
    %12 = vector.multi_reduction <add>, %11, %cst_7 [0] : vector<8x8xf32> to vector<8xf32>
    %13 = vector.shape_cast %12 : vector<8xf32> to vector<1x8xf32>
    %14 = vector.broadcast %3 : vector<1x1xf32> to vector<1x8xf32>
    %15 = arith.addf %13, %14 : vector<1x8xf32>
    %c0_8 = arith.constant 0 : index
    %c0_9 = arith.constant 0 : index
    %16 = vector.load %arg2[%c0_8, %c0_9] : memref<1x8xf32, #tpu.memory_space<vmem>>, vector<1x8xf32>
    tpu.vector_store %arg2[%c0_8, %c0_9], %15 {strides = array<i32>} : memref<1x8xf32, #tpu.memory_space<vmem>>, vector<1x8xf32>,
    return
  }
}

</mosaic_0001>

<bundles_post_ra>
// kernel: tpu_custom_call.1
= control target key start
LH: loop header
LB: loop body
LE: loop exit
PB: predicated region body
PF: predicated region fallthrough
CT: control target
= control target key end

     0   :  { %7 = vsyncpa [#allocation3], 0  ;;  %s310_s0 = inlined_call_operand.hbm [shape: f32[8,10], index: 0, kind: input, shape index: {}]   ;;  %s311_s1 = inlined_call_operand.hbm [shape: f32[8,16], index: 1, kind: input, shape index: {}]   ;;  %s312_s2 = inlined_call_operand.hbm [shape: f32[1,8], index: 2, kind: output, shape index: {}]  }
   0x1   :  { %8 = vsyncpa [#allocation6], 0 }
   0x2   :  { %9 = vsyncpa [#allocation4], 0  ;;  %s251_s9 = smov [#allocation2]   ;;  %s252_s11 = smov [#allocation5]  }
   0x3   :  { %s16_s10 = sshll.u32 %s251_s9, 4  ;;  %s26_s12 = sshll.u32 %s252_s11, 4  ;;  %s17_s10 = int_to_ptr.vmem [resolvable:$true] %s16_s10  ;;  %s27_s12 = int_to_ptr.vmem [resolvable:$true] %s26_s12 }
   0x4   :  { %s179_s15 = scalar_lea.hbm %s310_s0, 128 }
   0x5   :  { %p180_p0 = scmp.ne.s32.totalorder %s310_s0, %s179_s15  ;;  %p183_p1 = scmp.lt.u32.totalorder %s179_s15, %s310_s0 }
   0x7   :  { %p185_p2 = pnand %p183_p1, %p180_p0 }
   0x9   :  { %188 = shalt.err (!%p185_p2)
}
   0xa   :  { %s189_s20 = scalar_lea.vmem %s17_s10, 128  ;;  %p194_p4 = scmp.lt.s32.totalorder %s17_s10, %s17_s10 }
   0xb   :  { %p190_p3 = scmp.ne.s32.totalorder %s17_s10, %s189_s20  ;;  %p195_p5 = scmp.lt.s32.totalorder %s189_s20, %s189_s20 }
   0xd   :  { %p196_p6 = por %p195_p5, %p194_p4 }
   0xf   :  { %p197_p7 = pnand %p196_p6, %p190_p3 }
  0x11   :  { %200 = shalt.err (!%p197_p7)
}
  0x12   :  { %19 = dma.hbm_to_vmem [thread:$0]  %s310_s0, 128, %s17_s10, [#allocation3]  }
  0x13   :  { %s201_s25 = scalar_lea.hbm %s311_s1, 128 }
  0x14   :  { %p202_p8 = scmp.ne.s32.totalorder %s311_s1, %s201_s25  ;;  %p205_p9 = scmp.lt.u32.totalorder %s201_s25, %s311_s1 }
  0x16   :  { %p207_p10 = pnand %p205_p9, %p202_p8 }
  0x18   :  { %210 = shalt.err (!%p207_p10)
}
  0x19   :  { %s211_s30 = scalar_lea.vmem %s27_s12, 128  ;;  %p216_p12 = scmp.lt.s32.totalorder %s27_s12, %s27_s12 }
  0x1a   :  { %p212_p11 = scmp.ne.s32.totalorder %s27_s12, %s211_s30  ;;  %p217_p13 = scmp.lt.s32.totalorder %s211_s30, %s211_s30 }
  0x1c   :  { %p218_p0 = por %p217_p13, %p216_p12 }
  0x1e   :  { %p219_p1 = pnand %p218_p0, %p212_p11 }
  0x20   :  { %222 = shalt.err (!%p219_p1)
}
  0x21   :  { %29 = dma.hbm_to_vmem [thread:$0]  %s311_s1, 128, %s27_s12, [#allocation6]  }
  0x22   :  { %245 = dma.done.wait [#allocation3], 128  }
  0x23   :  { %246 = vsyncadd [#allocation3], 4294967168 }
  0x24   :  { %247 = dma.done.wait [#allocation6], 128  }
  0x25   :  { %248 = vsyncadd [#allocation6], 4294967168  ;;  %v253_v0 = vmov 0.0   ;;  %vm254_vm0 = vmmov 0   ;;  %v255_v1 = vmov 10   ;;  %v256_v2 = vmov 12  }
  0x26   :  { %162 = vmatprep.subr.mxu0 %v253_v0  ;;  %164 = vmatprep.mubr.msk.f32.mxu0 %vm254_vm0, %v253_v0  ;;  %vm44_vm1 = vcmask 80896   ;;  %v38_v3 = vld [vmem:[#allocation2] sm:$0xff]  ;;  %v36_v4 = vld [vmem:[#allocation5] sm:$0xff]  ;;  %v257_v6 = vmov 11   ;;  %vm126_vm2 = vcmask 64512   ;;  %s258_s1 = smov [#allocation7]  }
  0x27   :  { %175 = vset.pattern.permute.xlu0 %v255_v1  ;;  %177 = vset.pattern.permute.xlu1 %v256_v2  ;;  %v37_v5 = vld [vmem:[#allocation5] sm:$0x1]  ;;  %s148_s4 = sshll.u32 %s258_s1, 4  ;;  %vm140_vm3 = vcmask 57344   ;;  %s149_s4 = int_to_ptr.vmem [resolvable:$true] %s148_s4 }
  0x28   :  { %163 = vmatpush3.xpose.msk.msra.mxu0 %vm44_vm1, %v38_v3  ;;  %41 = vperm.xlu0 %175, %v36_v4   ;;  %s223_s5 = scalar_lea.vmem %s149_s4, 16  ;;  %s227_s6 = scalar_lea.vmem %s149_s4, 32 }
  0x29   :  { %136 = vperm.xlu1 %177, %v37_v5   ;;  %p224_p2 = scmp.ne.s32.totalorder %s149_s4, %s223_s5  ;;  %p228_p3 = scmp.lt.s32.totalorder %s149_s4, %s149_s4 }
  0x2a   :  { %p229_p4 = scmp.lt.s32.totalorder %s227_s6, %s223_s5 }
  0x2b   :  { %165 = vmatmul.mubr.msk.f32.vlgmr.msra.gmra.mrb[0].mxu0 %vm44_vm1, %v36_v4 }
  0x2c   :  { %176 = vset.pattern.permute.xlu0 %v257_v6  ;;  %p230_p5 = por %p229_p4, %p228_p3 }
  0x2d   :  { %122 = vperm.xlu0 %176, %v36_v4  }
  0x2e   :  { %p231_p6 = pnand %p230_p5, %p224_p2 }
  0x31   :  { %178 = vset.pattern.permute.xlu0 %v256_v2 }
  0xa7   :  { %v42_v7 = vpop.permute.xlu0 %41 }
  0xa8   :  { %v137_v20 = vpop.permute.xlu1 %136 }
  0xac   :  { %v123_v11 = vpop.permute.xlu0 %122 }
  0xfe   :  { %v116_v8 = vpop.f32.mrb[0].mxu0 }
  0xff   :  { %v117_v9 = vadd.f32 %v116_v8, %v42_v7  ;;  %v166_v10 = vpop.f32.mrb[1].mxu0 }
 0x101   :  { %v120_v12 = vmax.f32 %v117_v9, 0.0 }
 0x103   :  { %v125_v13 = vmul.f32 %v123_v11, %v120_v12 }
 0x105   :  { %v127_v14 = vsel %vm126_vm2, %v125_v13, 0.0 }
 0x106   :  { %v128_v15 = vrot.slane %v127_v14, 4 }
 0x108   :  { %v129_v16 = vadd.f32 %v128_v15, %v127_v14 }
 0x10a   :  { %v130_v17 = vrot.slane %v129_v16, 2 }
 0x10c   :  { %v131_v18 = vadd.f32 %v130_v17, %v129_v16 }
 0x10e   :  { %v132_v19 = vrot.slane %v131_v18, 1 }
 0x110   :  { %v133_v21 = vadd.f32 %v132_v19, %v131_v18 }
 0x112   :  { %v139_v22 = vadd.f32 %v137_v20, %v133_v21 }
 0x114   :  { %141 = vst.msk [vmem:[#allocation7] sm:$0x1] %vm140_vm3, %v139_v22 }
 0x115   :  { %234 = shalt.err (!%p231_p6)
}
 0x116   :  { %s235_s9 = scalar_lea.hbm %s312_s2, 16 }
 0x117   :  { %p236_p7 = scmp.ne.s32.totalorder %s312_s2, %s235_s9  ;;  %p239_p8 = scmp.lt.u32.totalorder %s235_s9, %s312_s2 }
 0x119   :  { %p241_p9 = pnand %p239_p8, %p236_p7 }
 0x11b   :  { %244 = shalt.err (!%p241_p9)
}
 0x11c   :  { %151 = dma.vmem_to_hbm [thread:$0]  %s149_s4, 16, %s312_s2, [#allocation4]  }
 0x11d   :  { %249 = dma.done.wait [#allocation4], 16  }
 0x11e   :  { %250 = vsyncadd [#allocation4], 4294967280 }
 0x11f   :  { %155 = vsyncpa [#allocation3], 1 }
 0x120   :  { %156 = vsyncpa [#allocation6], 1 }
 0x121   :  { %157 = vsyncpa [#allocation4], 1 }

</bundles_post_ra>
